<compile_context>
chip_gen: v7x
topology: tpu7x:2x2x1
jax: 0.10.0
libtpu: 0.0.40
codegen_flags: <defaults>
</compile_context>

<pallas_src>
import functools

import jax
import jax.numpy as jnp
from jax import lax
from jax.experimental import pallas as pl
from jax.experimental.pallas import tpu as pltpu


def _s_resblock_kernel(x_ref, w1_ref, b1_ref, w2_ref, b2_ref, o_ref, lhs_ref,
                       *, Nb, H, WC, res_scale):
    """One batch-of-Nb images per grid step, folded into the matmul M dimension.

    x_ref  : (1, Nb*H, WC)  lane-dense activations (WC = W*C), f32
    w*_ref : (3*WC, WC)     ky-stacked block-banded conv weights, bf16
    b*_ref : (1, WC)        lane-dense bias row, f32
    o_ref  : (1, Nb*H, WC)
    lhs_ref: VMEM scratch (Nb*H, 3*WC) f32 -- stacked-K im2row buffer
    """
    f32 = jnp.float32
    bf16 = jnp.bfloat16
    M = Nb * H

    # Per-image zero halo rows of the shifted lane blocks (SAME padding along H).  They are
    # never overwritten by the im2row stores below, but are re-zeroed every grid step so
    # each megacore's (uninitialized, per-core) scratch is correct on its own first step.
    zrow = jnp.zeros((1, WC), f32)
    for n in range(Nb):
        lhs_ref[n * H:n * H + 1, 0:WC] = zrow                        # ky=0 tap: y-1 < 0
        lhs_ref[(n + 1) * H - 1:(n + 1) * H, 2 * WC:3 * WC] = zrow   # ky=2 tap: y+1 >= H

    def conv3x3(v, w_ref):
        # v: (M, WC) f32.  Build the lane-aligned stacked-K LHS (one 128-lane block per
        # row tap, per-image SAME row padding), then contract all 3 row taps + 3 column
        # taps + channels in a single K = 3*WC MXU matmul (bf16 in, f32 accumulate).
        lhs_ref[:, WC:2 * WC] = v                                    # ky=1 (center) tap
        for n in range(Nb):
            r0 = n * H
            lhs_ref[r0 + 1:r0 + H, 0:WC] = v[r0:r0 + H - 1]          # ky=0 tap: row y-1
            lhs_ref[r0:r0 + H - 1, 2 * WC:3 * WC] = v[r0 + 1:r0 + H]  # ky=2 tap: row y+1
        return jnp.dot(lhs_ref[...].astype(bf16), w_ref[...],
                       preferred_element_type=f32)                   # (M, WC) f32 acc

    x = x_ref[0].astype(f32)                                         # (M, WC)
    h = jnp.maximum(conv3x3(x, w1_ref) + b1_ref[...], f32(0.0))      # conv1 + bias + ReLU
    res = conv3x3(h, w2_ref) + b2_ref[...]                           # conv2 + bias
    if res_scale != 1.0:
        res = res * f32(res_scale)                                   # .mul(res_scale)
    o_ref[0] = (res + x).astype(o_ref.dtype)                         # res += x (skip)


def _stacked_banded_weights(w, W, C, dtype=jnp.bfloat16):
    """Fold the 3 column taps + channel contraction of a 3x3 HWIO conv into a ky-stacked
    block-banded matrix.

    w: (3, 3, C, C) HWIO  ->  R: (3*W*C, W*C) with
       R[ky*W*C + xi*C + ci, xo*C + co] = w[ky, xi - xo + 1, ci, co]  for |xi - xo| <= 1,
    zero elsewhere (image-edge columns are truncated == SAME zero padding along W).
    """
    WC = W * C
    B = jnp.zeros((3, WC, WC), jnp.float32)
    for kx in range(3):
        for xo in range(W):
            xi = xo + kx - 1
            if 0 <= xi < W:
                B = B.at[:, xi * C:(xi + 1) * C, xo * C:(xo + 1) * C].set(
                    w[:, kx].astype(jnp.float32))
    return B.reshape(3 * WC, WC).astype(dtype)


def s_resblock(x, w1, b1, w2, b2, *, res_scale=1.0, images_per_step=None):
    """x: (N, H, W, C) f32; w*: (3, 3, C, C) HWIO; b*: (C,) or (1, C)."""
    N, H, W, C = x.shape
    WC = W * C

    # Fill the MXU M dimension (~128-256 rows) by folding several images into one grid
    # step, while keeping >= 2 grid steps when possible so both v7x TensorCores get work.
    # (For very large H, an additional H-tile grid axis with 1-row halos would be used.)
    if images_per_step is None:
        if N >= 2:
            images_per_step = max(1, min(max(1, 256 // H), pl.cdiv(N, 2)))
        else:
            images_per_step = 1
    Nb = int(images_per_step)
    M = Nb * H
    steps = pl.cdiv(N, Nb)
    Np = steps * Nb

    # Host-side weight/bias re-layout (done once): ky-stacked block-banded bf16 matrices so
    # each conv is a single (M, 3*WC) @ (3*WC, WC) MXU matmul with f32 accumulation.
    R1 = _stacked_banded_weights(w1, W, C)                               # (3*WC, WC) bf16
    R2 = _stacked_banded_weights(w2, W, C)
    brow1 = jnp.tile(jnp.asarray(b1, jnp.float32).reshape(1, C), (1, W))  # (1, WC) f32
    brow2 = jnp.tile(jnp.asarray(b2, jnp.float32).reshape(1, C), (1, W))

    # Lane-dense activation layout, Nb images stacked along the sublane (M) axis.
    x2 = x.reshape(N, H, WC)
    if Np != N:
        x2 = jnp.concatenate([x2, jnp.zeros((Np - N, H, WC), x2.dtype)], axis=0)
    x2 = x2.reshape(steps, M, WC)

    # VMEM budget: resident bf16 weights + double-buffered activation/output blocks +
    # im2row scratch.  Guard for v7x's 64 MiB VMEM: at WC >~ 1024 the resident weights
    # should instead be tiled along W (128-256 lane blocks with a C-lane halo) or streamed.
    w_bytes = 2 * 3 * WC * WC * 2                      # two stacked bf16 weight matrices
    act_bytes = 2 * (M * WC * x.dtype.itemsize) * 2    # in + out blocks, double-buffered
    scratch_bytes = M * 3 * WC * 4
    vmem_est = 2 * (w_bytes + 2 * WC * 4) + act_bytes + scratch_bytes
    vmem_limit = int(min(96 * 2**20, max(32 * 2**20, 1.5 * vmem_est)))

    kernel = functools.partial(_s_resblock_kernel, Nb=Nb, H=H, WC=WC,
                               res_scale=float(res_scale))
    out = pl.pallas_call(
        kernel,
        out_shape=jax.ShapeDtypeStruct((steps, M, WC), x.dtype),
        grid=(steps,),
        in_specs=[
            pl.BlockSpec((1, M, WC), lambda g: (g, 0, 0)),   # activations: streamed
            # Constant index_maps -> weights/biases stay resident in VMEM across steps.
            pl.BlockSpec((3 * WC, WC), lambda g: (0, 0)),
            pl.BlockSpec((1, WC), lambda g: (0, 0)),
            pl.BlockSpec((3 * WC, WC), lambda g: (0, 0)),
            pl.BlockSpec((1, WC), lambda g: (0, 0)),
        ],
        out_specs=pl.BlockSpec((1, M, WC), lambda g: (g, 0, 0)),
        scratch_shapes=[pltpu.VMEM((M, 3 * WC), jnp.float32)],  # stacked-K im2row buffer
        compiler_params=pltpu.CompilerParams(
            dimension_semantics=("parallel",),
            vmem_limit_bytes=vmem_limit),
    )(x2, R1, brow1, R2, brow2)

    return out.reshape(Np, H, W, C)[:N]


if __name__ == "__main__":
    # Small shapes consistent with the module: n_feats=8 channels, kernel_size=3.
    # W*C = 16*8 = 128 -> one full lane tile per image row.
    N, C, H, W = 2, 8, 16, 16
    res_scale = 1.0  # module default

    key = jax.random.PRNGKey(0)
    kx, k1, kb1, k2, kb2 = jax.random.split(key, 5)

    x = jax.random.normal(kx, (N, H, W, C), jnp.float32)

    # Deterministic parameter init (PyTorch-Conv2d-like uniform bounds), HWIO layout.
    fan_in = C * 3 * 3
    bound = 1.0 / (fan_in ** 0.5)
    w1 = jax.random.uniform(k1, (3, 3, C, C), jnp.float32, -bound, bound)
    b1 = jax.random.uniform(kb1, (C,), jnp.float32, -bound, bound)
    w2 = jax.random.uniform(k2, (3, 3, C, C), jnp.float32, -bound, bound)
    b2 = jax.random.uniform(kb2, (C,), jnp.float32, -bound, bound)

    out = jax.block_until_ready(s_resblock(x, w1, b1, w2, b2, res_scale=res_scale))

    # Pure-JAX f32 reference (same NHWC/HWIO convention, SAME padding).
    def reference(x):
        dn = ("NHWC", "HWIO", "NHWC")
        h = lax.conv_general_dilated(x, w1, (1, 1), "SAME", dimension_numbers=dn,
                                     precision=lax.Precision.HIGHEST)
        h = h + b1.reshape(1, 1, 1, C)
        h = jnp.maximum(h, 0.0)
        r = lax.conv_general_dilated(h, w2, (1, 1), "SAME", dimension_numbers=dn,
                                     precision=lax.Precision.HIGHEST)
        r = r + b2.reshape(1, 1, 1, C)
        return r * res_scale + x

    expected = reference(x)
    assert out.shape == (N, H, W, C)
    err = float(jnp.max(jnp.abs(out - expected)))
    # Tolerance relaxed vs the all-f32 version: MXU operands are bf16 (f32 accumulation).
    assert jnp.allclose(out, expected, atol=5e-2, rtol=5e-2), f"max abs err = {err}"
    print("KERNEL_OK")
</pallas_src>

<mosaic_0001>
module attributes {stable_mosaic.version = 11 : i64} {
  func.func @_s_resblock_kernel(%arg0: i32, %arg1: memref<1x16x128xf32, #tpu.memory_space<vmem>>, %arg2: memref<384x128xbf16, #tpu.memory_space<vmem>>, %arg3: memref<1x128xf32, #tpu.memory_space<vmem>>, %arg4: memref<384x128xbf16, #tpu.memory_space<vmem>>, %arg5: memref<1x128xf32, #tpu.memory_space<vmem>>, %arg6: memref<1x16x128xf32, #tpu.memory_space<vmem>>, %arg7: memref<16x384xf32, #tpu.memory_space<vmem>>) attributes {dimension_semantics = [#tpu.dimension_semantics<parallel>], iteration_bounds = array<i64: 2>, scalar_prefetch = 0 : i64, scratch_operands = 1 : i64, tpu.core_type = #tpu.core_type<tc>, window_params = [{transform_indices = @transform_0, window_bounds = array<i64: 1, 16, 128>}, {pipeline_mode = #tpu.pipeline_mode<synchronous>, transform_indices = @transform_1, window_bounds = array<i64: 384, 128>}, {pipeline_mode = #tpu.pipeline_mode<synchronous>, transform_indices = @transform_2, window_bounds = array<i64: 1, 128>}, {pipeline_mode = #tpu.pipeline_mode<synchronous>, transform_indices = @transform_3, window_bounds = array<i64: 384, 128>}, {pipeline_mode = #tpu.pipeline_mode<synchronous>, transform_indices = @transform_4, window_bounds = array<i64: 1, 128>}, {transform_indices = @transform_5, window_bounds = array<i64: 1, 16, 128>}]} {
    %cst = arith.constant 0.000000e+00 : f32
    %0 = vector.broadcast %cst : f32 to vector<1x128xf32>
    %c0 = arith.constant 0 : index
    %c0_0 = arith.constant 0 : index
    %1 = vector.load %arg7[%c0, %c0_0] : memref<16x384xf32, #tpu.memory_space<vmem>>, vector<1x128xf32>
    tpu.vector_store %arg7[%c0, %c0_0], %0 {strides = array<i32>} : memref<16x384xf32, #tpu.memory_space<vmem>>, vector<1x128xf32>,
    %c15 = arith.constant 15 : index
    %c256 = arith.constant 256 : index
    %2 = vector.load %arg7[%c15, %c256] : memref<16x384xf32, #tpu.memory_space<vmem>>, vector<1x128xf32>
    tpu.vector_store %arg7[%c15, %c256], %0 {strides = array<i32>} : memref<16x384xf32, #tpu.memory_space<vmem>>, vector<1x128xf32>,
    %c0_1 = arith.constant 0 : index
    %c0_2 = arith.constant 0 : index
    %c0_3 = arith.constant 0 : index
    %3 = vector.load %arg1[%c0_1, %c0_2, %c0_3] : memref<1x16x128xf32, #tpu.memory_space<vmem>>, vector<1x16x128xf32>
    %4 = vector.shape_cast %3 : vector<1x16x128xf32> to vector<16x128xf32>
    %c0_4 = arith.constant 0 : index
    %c128 = arith.constant 128 : index
    %5 = vector.load %arg7[%c0_4, %c128] : memref<16x384xf32, #tpu.memory_space<vmem>>, vector<16x128xf32>
    tpu.vector_store %arg7[%c0_4, %c128], %4 {strides = array<i32>} : memref<16x384xf32, #tpu.memory_space<vmem>>, vector<16x128xf32>,
    %6 = vector.extract_strided_slice %4 {offsets = [0, 0], sizes = [15, 128], strides = [1, 1]} : vector<16x128xf32> to vector<15x128xf32>
    %c1 = arith.constant 1 : index
    %c0_5 = arith.constant 0 : index
    %7 = vector.load %arg7[%c1, %c0_5] : memref<16x384xf32, #tpu.memory_space<vmem>>, vector<15x128xf32>
    tpu.vector_store %arg7[%c1, %c0_5], %6 {strides = array<i32>} : memref<16x384xf32, #tpu.memory_space<vmem>>, vector<15x128xf32>,
    %8 = vector.extract_strided_slice %4 {offsets = [1, 0], sizes = [15, 128], strides = [1, 1]} : vector<16x128xf32> to vector<15x128xf32>
    %c0_6 = arith.constant 0 : index
    %c256_7 = arith.constant 256 : index
    %9 = vector.load %arg7[%c0_6, %c256_7] : memref<16x384xf32, #tpu.memory_space<vmem>>, vector<15x128xf32>
    tpu.vector_store %arg7[%c0_6, %c256_7], %8 {strides = array<i32>} : memref<16x384xf32, #tpu.memory_space<vmem>>, vector<15x128xf32>,
    %c0_8 = arith.constant 0 : index
    %c0_9 = arith.constant 0 : index
    %10 = vector.load %arg7[%c0_8, %c0_9] : memref<16x384xf32, #tpu.memory_space<vmem>>, vector<16x384xf32>
    %11 = arith.truncf %10 : vector<16x384xf32> to vector<16x384xbf16>
    %c0_10 = arith.constant 0 : index
    %c0_11 = arith.constant 0 : index
    %12 = vector.load %arg2[%c0_10, %c0_11] : memref<384x128xbf16, #tpu.memory_space<vmem>>, vector<384x128xbf16>
    %cst_12 = arith.constant dense<0.000000e+00> : vector<16x128xf32>
    %13 = tpu.matmul %11, %12, %cst_12 {dimension_numbers = #tpu.dot_dimension_numbers<[1], [0], [0], [1], [0, 0, 1, 1], [], []>} : vector<16x384xbf16>, vector<384x128xbf16>, vector<16x128xf32> -> vector<16x128xf32>
    %c0_13 = arith.constant 0 : index
    %c0_14 = arith.constant 0 : index
    %14 = vector.load %arg3[%c0_13, %c0_14] : memref<1x128xf32, #tpu.memory_space<vmem>>, vector<1x128xf32>
    %15 = vector.broadcast %14 : vector<1x128xf32> to vector<16x128xf32>
    %16 = arith.addf %13, %15 : vector<16x128xf32>
    %cst_15 = arith.constant 0.000000e+00 : f32
    %17 = vector.broadcast %cst_15 : f32 to vector<16x128xf32>
    %18 = arith.maximumf %16, %17 : vector<16x128xf32>
    %c0_16 = arith.constant 0 : index
    %c128_17 = arith.constant 128 : index
    %19 = vector.load %arg7[%c0_16, %c128_17] : memref<16x384xf32, #tpu.memory_space<vmem>>, vector<16x128xf32>
    tpu.vector_store %arg7[%c0_16, %c128_17], %18 {strides = array<i32>} : memref<16x384xf32, #tpu.memory_space<vmem>>, vector<16x128xf32>,
    %20 = vector.extract_strided_slice %18 {offsets = [0, 0], sizes = [15, 128], strides = [1, 1]} : vector<16x128xf32> to vector<15x128xf32>
    %c1_18 = arith.constant 1 : index
    %c0_19 = arith.constant 0 : index
    %21 = vector.load %arg7[%c1_18, %c0_19] : memref<16x384xf32, #tpu.memory_space<vmem>>, vector<15x128xf32>
    tpu.vector_store %arg7[%c1_18, %c0_19], %20 {strides = array<i32>} : memref<16x384xf32, #tpu.memory_space<vmem>>, vector<15x128xf32>,
    %22 = vector.extract_strided_slice %18 {offsets = [1, 0], sizes = [15, 128], strides = [1, 1]} : vector<16x128xf32> to vector<15x128xf32>
    %c0_20 = arith.constant 0 : index
    %c256_21 = arith.constant 256 : index
    %23 = vector.load %arg7[%c0_20, %c256_21] : memref<16x384xf32, #tpu.memory_space<vmem>>, vector<15x128xf32>
    tpu.vector_store %arg7[%c0_20, %c256_21], %22 {strides = array<i32>} : memref<16x384xf32, #tpu.memory_space<vmem>>, vector<15x128xf32>,
    %c0_22 = arith.constant 0 : index
    %c0_23 = arith.constant 0 : index
    %24 = vector.load %arg7[%c0_22, %c0_23] : memref<16x384xf32, #tpu.memory_space<vmem>>, vector<16x384xf32>
    %25 = arith.truncf %24 : vector<16x384xf32> to vector<16x384xbf16>
    %c0_24 = arith.constant 0 : index
    %c0_25 = arith.constant 0 : index
    %26 = vector.load %arg4[%c0_24, %c0_25] : memref<384x128xbf16, #tpu.memory_space<vmem>>, vector<384x128xbf16>
    %cst_26 = arith.constant dense<0.000000e+00> : vector<16x128xf32>
    %27 = tpu.matmul %25, %26, %cst_26 {dimension_numbers = #tpu.dot_dimension_numbers<[1], [0], [0], [1], [0, 0, 1, 1], [], []>} : vector<16x384xbf16>, vector<384x128xbf16>, vector<16x128xf32> -> vector<16x128xf32>
    %c0_27 = arith.constant 0 : index
    %c0_28 = arith.constant 0 : index
    %28 = vector.load %arg5[%c0_27, %c0_28] : memref<1x128xf32, #tpu.memory_space<vmem>>, vector<1x128xf32>
    %29 = vector.broadcast %28 : vector<1x128xf32> to vector<16x128xf32>
    %30 = arith.addf %27, %29 : vector<16x128xf32>
    %31 = arith.addf %30, %4 : vector<16x128xf32>
    %c0_29 = arith.constant 0 : index
    %c0_30 = arith.constant 0 : index
    %c0_31 = arith.constant 0 : index
    %32 = vector.load %arg6[%c0_29, %c0_30, %c0_31] : memref<1x16x128xf32, #tpu.memory_space<vmem>>, vector<1x16x128xf32>
    %33 = vector.shape_cast %32 : vector<1x16x128xf32> to vector<16x128xf32>
    %34 = vector.shape_cast %31 : vector<16x128xf32> to vector<1x16x128xf32>
    tpu.vector_store %arg6[%c0_29, %c0_30, %c0_31], %34 {strides = array<i32>} : memref<1x16x128xf32, #tpu.memory_space<vmem>>, vector<1x16x128xf32>,
    return
  }
  func.func @transform_0(%arg0: i32) -> (i32, i32, i32) {
    %c0_i32 = arith.constant 0 : i32
    %c0_i32_0 = arith.constant 0 : i32
    %c0_i32_1 = arith.constant 0 : i32
    return %arg0, %c0_i32, %c0_i32_0 : i32, i32, i32
  }
  func.func @transform_1(%arg0: i32) -> (i32, i32) {
    %c0_i32 = arith.constant 0 : i32
    %c0_i32_0 = arith.constant 0 : i32
    %c0_i32_1 = arith.constant 0 : i32
    return %c0_i32, %c0_i32_0 : i32, i32
  }
  func.func @transform_2(%arg0: i32) -> (i32, i32) {
    %c0_i32 = arith.constant 0 : i32
    %c0_i32_0 = arith.constant 0 : i32
    %c0_i32_1 = arith.constant 0 : i32
    return %c0_i32, %c0_i32_0 : i32, i32
  }
  func.func @transform_3(%arg0: i32) -> (i32, i32) {
    %c0_i32 = arith.constant 0 : i32
    %c0_i32_0 = arith.constant 0 : i32
    %c0_i32_1 = arith.constant 0 : i32
    return %c0_i32, %c0_i32_0 : i32, i32
  }
  func.func @transform_4(%arg0: i32) -> (i32, i32) {
    %c0_i32 = arith.constant 0 : i32
    %c0_i32_0 = arith.constant 0 : i32
    %c0_i32_1 = arith.constant 0 : i32
    return %c0_i32, %c0_i32_0 : i32, i32
  }
  func.func @transform_5(%arg0: i32) -> (i32, i32, i32) {
    %c0_i32 = arith.constant 0 : i32
    %c0_i32_0 = arith.constant 0 : i32
    %c0_i32_1 = arith.constant 0 : i32
    return %arg0, %c0_i32, %c0_i32_0 : i32, i32, i32
  }
}

</mosaic_0001>

<bundles_post_ra>
// kernel: tpu_custom_call.1
= control target key start
LH: loop header
LB: loop body
LE: loop exit
PB: predicated region body
PF: predicated region fallthrough
CT: control target
= control target key end

     0   :  { %10 = vsyncpa [#allocation4], 0  ;;  %s1788_s0 = inlined_call_operand.hbm [shape: f32[2,16,128], index: 0, kind: input, shape index: {}]   ;;  %s1789_s1 = inlined_call_operand.hbm [shape: bf16[384,128], index: 1, kind: input, shape index: {}]   ;;  %s1790_s2 = inlined_call_operand.vmem [shape: f32[1,128], index: 2, kind: input, shape index: {}]   ;;  %s1791_s3 = inlined_call_operand.hbm [shape: bf16[384,128], index: 3, kind: input, shape index: {}]   ;;  %s1792_s4 = inlined_call_operand.vmem [shape: f32[1,128], index: 4, kind: input, shape index: {}]   ;;  %s1793_s5 = inlined_call_operand.hbm [shape: f32[2,16,128], index: 5, kind: output, shape index: {}]  }
   0x1   :  { %12 = vsyncpa [#allocation4 + $0x1], 0 }
   0x2   :  { %13 = vsyncpa [#allocation7], 0 }
   0x3   :  { %14 = vsyncpa [#allocation5], 0 }
   0x4   :  { %16 = vsyncpa [#allocation5 + $0x1], 0  ;;  %s1502_s18 = smov 0   ;;  %s1504_s19 = smov 0  }
   0x5   :  { %s1506_s20 = smov 0   ;;  %s1508_s21 = smov 0  }
   0x6 LB: > { %s1523_s22 = sadd.s32 4294967295, %s1458_s21   ;;  %s1007_s23 = sadd.s32 4294967294, %s1458_s21   ;;  %s1458_s21 = sphi %s1508_s21, %s1813_s21   ;;  %s1454_s20 = sphi %s1506_s20, %s1812_s20   ;;  %s1450_s19 = sphi %s1504_s19, %s1811_s19   ;;  %s1446_s18 = sphi %s1502_s18, %s1810_s18  }
   0x7   : > { %p42_p0 = scmp.ne.s32.totalorder %s1450_s19, %s1446_s18  ;;  %p1794_p1 = scmp.eq.s32.totalorder %s1523_s22, 0 }
   0x8   : > { %p156_p3 = scmp.eq.s32.totalorder %s1007_s23, 1  ;;  %p1008_p5 = scmp.ge.s32.totalorder %s1458_s21, 1 }
   0x9   : > { %p1532_p4 = por %p1794_p1, %p42_p0  ;;  %p163_p7 = scmp.lt.s32.totalorder %s1458_s21, 3 }
   0xa   : > { %p1537_p6 = por %p156_p3, %p42_p0  ;;  %s1460_s27 = smov [#allocation6]  }
   0xb   : > { %s1797_s24 = scalar_select %p1532_p4, 1, 0 }
   0xc   : > { %s1798_s25 = scalar_select %p1537_p6, 1, 0 }
   0xd   : > { %p1542_p8 = pnand %p1008_p5, %p163_p7  ;;  %s175_s28 = sshll.u32 %s1460_s27, 4  ;;  %s1546_s28 = int_to_ptr.vmem [resolvable:$true] %s175_s28 }
   0xe   : > { %s1461_s30 = smov [#allocation8]   ;;  %s1302_s9 = scalar_lea.hbm %s1789_s1, 3072 }
   0xf   : > { %p1191_p9 = pneg %p1542_p8  ;;  %s191_s6 = sshll.u32 %s1461_s30, 4  ;;  %s1557_s6 = int_to_ptr.vmem [resolvable:$true] %s191_s6 }
  0x10   : > { %p1303_p12 = scmp.ne.s32.totalorder %s1789_s1, %s1302_s9  ;;  %p1309_p5 = scmp.lt.u32.totalorder %s1302_s9, %s1789_s1 }
  0x11   : > { %p1553_p11 = pnand %p1191_p9, %p1794_p1 }
  0x13   : > { %p1304_p13 = pneg %p1553_p11 }
  0x15   : > { %p1305_p0 = pnand %p1304_p13, %p1303_p12 }
  0x17   : > { %p1306_p3 = pneg %p1305_p0 }
  0x19   : > { %p1311_p7 = pnand %p1309_p5, %p1306_p3 }
  0x1b   : > { %1314 = shalt.err (!%p1311_p7)
}
  0x1c   : > { %s1315_s14 = scalar_lea.vmem %s1546_s28, 3072  ;;  %p1323_p2 = scmp.lt.s32.totalorder %s1546_s28, %s1546_s28 }
  0x1d   : > { %p1316_p9 = scmp.ne.s32.totalorder %s1546_s28, %s1315_s14  ;;  %p1324_p12 = scmp.lt.s32.totalorder %s1315_s14, %s1315_s14 }
  0x1f   : > { %p1318_p10 = pnand %p1316_p9, %p1304_p13  ;;  %p1325_p0 = por %p1324_p12, %p1323_p2 }
  0x21   : > { %p1319_p1 = pneg %p1318_p10 }
  0x23   : > { %p1326_p6 = pnand %p1325_p0, %p1319_p1 }
  0x25   : > { %1329 = shalt.err (!%p1326_p6)
}
  0x26   : > { %s1462_s15 = smov 64   ;;  %s1463_s16 = smov 4  }
  0x27   : > { %1194 = dma.hbm_to_vmem [thread:$0]  (!%p1553_p11), %s1789_s1, 3072, %s1546_s28, [#allocation7], %s1462_s15, %s1462_s15, %s1463_s16  }
  0x28   : > { %s1330_s7 = scalar_lea.hbm %s1791_s3, 3072 }
  0x29   : > { %p1331_p2 = scmp.ne.s32.totalorder %s1791_s3, %s1330_s7  ;;  %p1337_p10 = scmp.lt.u32.totalorder %s1330_s7, %s1791_s3 }
  0x2b   : > { %p1333_p1 = pnand %p1331_p2, %p1304_p13 }
  0x2d   : > { %p1334_p6 = pneg %p1333_p1 }
  0x2f   : > { %p1339_p3 = pnand %p1337_p10, %p1334_p6 }
  0x31   : > { %1342 = shalt.err (!%p1339_p3)
}
  0x32   : > { %s1343_s28 = scalar_lea.vmem %s1557_s6, 3072  ;;  %p1351_p12 = scmp.lt.s32.totalorder %s1557_s6, %s1557_s6 }
  0x33   : > { %p1344_p5 = scmp.ne.s32.totalorder %s1557_s6, %s1343_s28  ;;  %p1352_p0 = scmp.lt.s32.totalorder %s1343_s28, %s1343_s28 }
  0x35   : > { %p1346_p7 = pnand %p1344_p5, %p1304_p13  ;;  %p1353_p2 = por %p1352_p0, %p1351_p12 }
  0x37   : > { %p1347_p9 = pneg %p1346_p7 }
  0x39   : > { %p1354_p1 = pnand %p1353_p2, %p1347_p9 }
  0x3b   : > { %1357 = shalt.err (!%p1354_p1)
}
  0x3c   : > { %1197 = dma.hbm_to_vmem [thread:$0]  (!%p1553_p11), %s1791_s3, 3072, %s1557_s6, [#allocation7], %s1462_s15, %s1462_s15, %s1463_s16  }
  0x3d   : > { %s1612_s14 = sadd.s32 1, %s1458_s21   ;;  %s29_s29 = sadd.s32 1, %s1454_s20 }
  0x3e   : > { %s26_s17 = ssub.s32 %s1458_s21, %s1612_s14  ;;  %p36_p13 = scmp.ne.s32.totalorder %s1454_s20, %s1450_s19 }
  0x3f   : > { %p27_p6 = scmp.eq.s32.totalorder %s26_s17, 0  ;;  %p37_p10 = scmp.eq.s32.totalorder %s1458_s21, 0 }
  0x40   : > { %p1801_p3 = scmp.eq.s32.totalorder %s1523_s22, 1  ;;  %p1208_p7 = scmp.lt.s32.totalorder %s1458_s21, 2 }
  0x41   : > { %s1628_s27 = scalar_select %p27_p6, %s1454_s20, %s29_s29  }
  0x42   : > { %p1622_p5 = por %p1801_p3, %p36_p13  ;;  %p38_p9 = por %p37_p10, %p36_p13 }
  0x43   : > { %s208_s30 = sand.u32 1, %s1454_s20   ;;  %s1075_s6 = sshll.u32 %s1458_s21, 8 }
  0x44   : > { %s1802_s23 = scalar_select %p1622_p5, 1, 0 }
  0x45   : > { %s1012_s7 = sshll.u32 %s208_s30, 4  ;;  %s1635_s8 = scalar_lea.hbm %s1788_s0, %s1075_s6 }
  0x46   : > { %s212_s9 = scalar_lea.vmem [#allocation3], %s1012_s7  ;;  %p1639_p11 = pnand %p1208_p7, %p38_p9 }
  0x47   : > { %s219_s10 = sshll.u32 %s212_s9, 4  ;;  %s1643_s28 = scalar_lea.sflag [#allocation4], %s208_s30  ;;  %s1637_s10 = int_to_ptr.vmem [resolvable:$true] %s219_s10 }
  0x48   : > { %s1358_s12 = scalar_lea.hbm %s1635_s8, 256  ;;  %p1360_p0 = pneg %p1639_p11 }
  0x49   : > { %p1359_p12 = scmp.ne.s32.totalorder %s1635_s8, %s1358_s12  ;;  %s1363_s17 = scalar_lea.hbm %s1788_s0, 512 }
  0x4a   : > { %p1364_p13 = scmp.lt.u32.totalorder %s1635_s8, %s1788_s0  ;;  %p1365_p6 = scmp.lt.u32.totalorder %s1363_s17, %s1358_s12 }
  0x4b   : > { %p1361_p2 = pnand %p1360_p0, %p1359_p12  ;;  %p1367_p3 = scmp.lt.u32.totalorder %s1358_s12, %s1635_s8 }
  0x4c   : > { %p1366_p10 = por %p1365_p6, %p1364_p13 }
  0x4d   : > { %p1362_p1 = pneg %p1361_p2 }
  0x4e   : > { %p1368_p7 = por %p1367_p3, %p1366_p10 }
  0x50   : > { %p1369_p9 = pnand %p1368_p7, %p1362_p1 }
  0x52   : > { %1372 = shalt.err (!%p1369_p9)
}
  0x53   : > { %s1373_s30 = scalar_lea.vmem %s1637_s10, 256  ;;  %s1464_s15 = smov [#allocation3]  }
  0x54   : > { %p1374_p12 = scmp.ne.s32.totalorder %s1637_s10, %s1373_s30  ;;  %s1378_s16 = sshll.u32 %s1464_s15, 4  ;;  %s1379_s16 = int_to_ptr.vmem [resolvable:$false] %s1378_s16 }
  0x55   : > { %s1380_s9 = scalar_lea.vmem %s1379_s16, 512  ;;  %p1381_p4 = scmp.lt.s32.totalorder %s1637_s10, %s1379_s16 }
  0x56   : > { %p1376_p2 = pnand %p1374_p12, %p1360_p0  ;;  %p1382_p13 = scmp.lt.s32.totalorder %s1380_s9, %s1373_s30 }
  0x58   : > { %p1377_p5 = pneg %p1376_p2  ;;  %p1383_p6 = por %p1382_p13, %p1381_p4 }
  0x5a   : > { %p1384_p10 = pnand %p1383_p6, %p1377_p5 }
  0x5c   : > { %1387 = shalt.err (!%p1384_p10)
}
  0x5d   : > { %s1465_s12 = smov 128   ;;  %s1466_s13 = smov 8  }
  0x5e   : > { %1201 = dma.hbm_to_vmem [thread:$0]  (!%p1639_p11), %s1635_s8, 256, %s1637_s10, %s1643_s28, %s1465_s12, %s1465_s12, %s1466_s13  }
  0x5f   : > { %231 = sbr.rel (%p1542_p8) target bundleno = 611 (0x263), region = 40  ;;  %s1674_s29 = sand.u32 (!%p1542_p8), 1, %s1450_s19  }
  0x60   : > { %s1016_s17 = sshll.u32 (!%p1542_p8), %s1674_s29, 4  ;;  %s234_s7 = scalar_lea.sflag (!%p1542_p8), [#allocation4], %s1674_s29 }
  0x61   : > { %s1680_s6 = scalar_lea.vmem (!%p1542_p8), [#allocation3], %s1016_s17  ;;  %p1804_p4 = scmp.ne.s32.totalorder (!%p1542_p8), %s1797_s24, 0 }
  0x66   : > { %1433 = dma.done.wait (%p1804_p4), %s234_s7, 256  }
  0x67   : > { %1435 = vsyncadd (%p1804_p4), %s234_s7, 4294967040  ;;  %p1805_p5 = scmp.eq.s32.totalorder %s1523_s22, 0 }
  0x69   : > { %1437 = dma.done.wait (%p1805_p5), [#allocation7], 6144   ;;  %p1806_p8 = pmov %p1805_p5 }
  0x6a   : > { %v1467_v0 = vmov 0.0   ;;  %vm1468_vm0 = vmmov 0   ;;  %v1254_v1 = vld [vmem:[#allocation6 + $0x40] sm:$0xff]   ;;  %v1257_v4 = vld [vmem:[#allocation6 + $0x48] sm:$0xff]   ;;  %v1260_v7 = vld [vmem:[#allocation6 + $0x50] sm:$0xff]   ;;  %vm281_vm1 = vcmask 1040384  }
  0x6b   : > { %1439 = vsyncadd (%p1806_p8), [#allocation7], 4294961152  ;;  %1139 = vmatprep.subr.bf16.mxu1 %v1467_v0  ;;  %273 = vst [vmem:[#allocation2] sm:$0x1] %v1467_v0  ;;  %1155 = vmatprep.mubr.msk.bf16.mxu1 %vm1468_vm0, %v1467_v0  ;;  %v1255_v2 = vld [vmem:[#allocation6] sm:$0xff]   ;;  %v1258_v5 = vld [vmem:[#allocation6 + $0x8] sm:$0xff]  }
  0x6c   : > { %274 = vst [vmem:[#allocation2 + $0x2f] sm:$0x1] %v1467_v0  ;;  %1077 = vmatprep.subr.bf16.mxu0 %v1254_v1  ;;  %v1256_v3 = vld [vmem:[#allocation6 + $0x80] sm:$0xff]   ;;  %v1259_v6 = vld [vmem:[#allocation6 + $0x88] sm:$0xff]   ;;  %v1261_v8 = vld [vmem:[#allocation6 + $0x10] sm:$0xff]   ;;  %vm289_vm2 = vcmask 1046528  }
  0x6d   : > { %1078 = vmatpush3.bf16.msra.mxu0 %v1255_v2  ;;  %1140 = vmatpush3.bf16.msra.mxu1 %v1256_v3  ;;  %v1262_v9 = vld [vmem:[#allocation6 + $0x90] sm:$0xff]   ;;  %v1263_v10 = vld [vmem:[#allocation6 + $0x58] sm:$0xff]   ;;  %v1266_v13 = vld [vmem:[#allocation6 + $0x60] sm:$0xff]   ;;  %s271_s11 = scalar_lea.vmem [#allocation9], %s1016_s17  ;;  %s1076_s30 = sshll.u32 %s1523_s22, 8 }
  0x6e   : > { %1079 = vmatprep.subr.bf16.mxu0 %v1257_v4  ;;  %1141 = vmatprep.subr.bf16.mxu1 %v1467_v0  ;;  %v1264_v11 = vld [vmem:[#allocation6 + $0x18] sm:$0xff]   ;;  %v1267_v14 = vld [vmem:[#allocation6 + $0x20] sm:$0xff]   ;;  %v1269_v16 = vld [vmem:[#allocation6 + $0x68] sm:$0xff]   ;;  %s915_s28 = sshll.u32 %s271_s11, 4  ;;  %s1741_s9 = scalar_lea.hbm %s1793_s5, %s1076_s30  ;;  %s1743_s28 = int_to_ptr.vmem [resolvable:$true] %s915_s28 }
  0x6f   : > { %v1265_v12 = vld [vmem:[#allocation6 + $0x98] sm:$0xff]   ;;  %v1268_v15 = vld [vmem:[#allocation6 + $0xa0] sm:$0xff]   ;;  %v1270_v17 = vld [vmem:[#allocation6 + $0x28] sm:$0xff]   ;;  %s902_s12 = scalar_lea.sflag [#allocation5], %s1674_s29  ;;  %s1388_s13 = scalar_lea.vmem %s1743_s28, 256 }
  0x70   : > { %v1271_v18 = vld [vmem:[#allocation6 + $0xa8] sm:$0xff]   ;;  %v1272_v19 = vld [vmem:[#allocation6 + $0x70] sm:$0xff]   ;;  %v1275_v24 = vld [vmem:[#allocation6 + $0x78] sm:$0xff]   ;;  %p1389_p11 = scmp.ne.s32.totalorder %s1743_s28, %s1388_s13  ;;  %p1807_p0 = scmp.ne.s32.totalorder %s1802_s23, 0 }
  0x71   : > { %1080 = vmatpush3.bf16.msra.mxu0 %v1258_v5  ;;  %1142 = vmatpush3.bf16.msra.mxu1 %v1259_v6  ;;  %v1273_v20 = vld [vmem:[#allocation6 + $0x30] sm:$0xff]   ;;  %v1704_v22 = vld [vmem:[%s1680_s6 + $0x8] sm:$0xff]  ;;  %v1278_v32 = vld [vmem:[#allocation8 + $0x40] sm:$0xff]   ;;  %s1469_s22 = smov [#allocation9]  }
  0x72   : > { %1081 = vmatprep.subr.bf16.mxu0 %v1260_v7  ;;  %1143 = vmatprep.subr.bf16.mxu1 %v1467_v0  ;;  %v1701_v21 = vld [vmem:[%s1680_s6] sm:$0xff]  ;;  %v291_v27 = vrot.slane %v1704_v22, 1  ;;  %v1276_v28 = vld [vmem:[#allocation6 + $0x38] sm:$0xff]   ;;  %v283_v29 = vrot.slane %v1704_v22, 7  ;;  %v1281_v37 = vld [vmem:[#allocation8 + $0x48] sm:$0xff]   ;;  %p1390_p1 = pnand %p1389_p11, %p1807_p0  ;;  %s1392_s17 = sshll.u32 %s1469_s22, 4  ;;  %s1393_s17 = int_to_ptr.vmem [resolvable:$false] %s1392_s17 }
  0x73   : > { %v1274_v23 = vld [vmem:[#allocation6 + $0xb0] sm:$0xff]   ;;  %v304_v25 = vpack.c.bf16 %v1704_v22, %v1701_v21  ;;  %v282_v26 = vrot.slane %v1701_v21, 7  ;;  %v1277_v30 = vld [vmem:[#allocation6 + $0xb8] sm:$0xff]   ;;  %v290_v31 = vrot.slane %v1701_v21, 1  ;;  %v1279_v34 = vld [vmem:[#allocation8] sm:$0xff]   ;;  %s1394_s7 = scalar_lea.vmem %s1393_s17, 512  ;;  %p1395_p7 = scmp.lt.s32.totalorder %s1743_s28, %s1393_s17 }
  0x74   : > { %296 = vst [vmem:[#allocation2 + $0x28] sm:$0x7f] %v291_v27  ;;  %v1280_v36 = vld [vmem:[#allocation8 + $0x80] sm:$0xff]   ;;  %v1282_v42 = vld [vmem:[#allocation8 + $0x8] sm:$0xff]   ;;  %v1284_v44 = vld [vmem:[#allocation8 + $0x50] sm:$0xff]   ;;  %p1391_p3 = pneg %p1390_p1  ;;  %p1396_p9 = scmp.lt.s32.totalorder %s1394_s7, %s1388_s13 }
  0x75   : > { %1082 = vmatpush3.bf16.msra.mxu0 %v1261_v8  ;;  %1144 = vmatpush3.bf16.msra.mxu1 %v1262_v9  ;;  %287 = vst [vmem:[#allocation2] sm:$0xfe] %v282_v26  ;;  %v284_v33 = vsel %vm281_vm1, %v282_v26, %v283_v29  ;;  %v292_v35 = vsel %vm289_vm2, %v290_v31, %v291_v27  ;;  %v1283_v43 = vld [vmem:[#allocation8 + $0x88] sm:$0xff]   ;;  %v1285_v45 = vld [vmem:[#allocation8 + $0x10] sm:$0xff]   ;;  %v1287_v47 = vld [vmem:[#allocation8 + $0x58] sm:$0xff]  }
  0x76   : > { %1083 = vmatprep.subr.bf16.mxu0 %v1263_v10  ;;  %1145 = vmatprep.subr.bf16.mxu1 %v1467_v0  ;;  %v1286_v46 = vld [vmem:[#allocation8 + $0x90] sm:$0xff]   ;;  %v1288_v48 = vld [vmem:[#allocation8 + $0x18] sm:$0xff]   ;;  %v1290_v50 = vld [vmem:[#allocation8 + $0x60] sm:$0xff]   ;;  %p1397_p12 = por %p1396_p9, %p1395_p7 }
  0x77   : > { %537 = vmatprep.mubr.bf16.mxu0 %v304_v25  ;;  %v1289_v49 = vld [vmem:[#allocation8 + $0x98] sm:$0xff]   ;;  %v1291_v51 = vld [vmem:[#allocation8 + $0x20] sm:$0xff]   ;;  %v1293_v53 = vld [vmem:[#allocation8 + $0x68] sm:$0xff]  }
  0x78   : > { %v1292_v52 = vld [vmem:[#allocation8 + $0xa0] sm:$0xff]   ;;  %v1294_v54 = vld [vmem:[#allocation8 + $0x28] sm:$0xff]   ;;  %v1296_v56 = vld [vmem:[#allocation8 + $0x70] sm:$0xff]   ;;  %p1398_p2 = pnand %p1397_p12, %p1391_p3 }
  0x79   : > { %1084 = vmatpush3.bf16.msra.mxu0 %v1264_v11  ;;  %1146 = vmatpush3.bf16.msra.mxu1 %v1265_v12  ;;  %v1295_v55 = vld [vmem:[#allocation8 + $0xa8] sm:$0xff]   ;;  %v1297_v57 = vld [vmem:[#allocation8 + $0x30] sm:$0xff]   ;;  %v1299_v59 = vld [vmem:[#allocation8 + $0x78] sm:$0xff]  }
  0x7a   : > { %1085 = vmatprep.subr.bf16.mxu0 %v1266_v13  ;;  %1147 = vmatprep.subr.bf16.mxu1 %v1467_v0  ;;  %v1298_v58 = vld [vmem:[#allocation8 + $0xb0] sm:$0xff]   ;;  %v1300_v60 = vld [vmem:[#allocation8 + $0x38] sm:$0xff]  }
  0x7b   : > { %v302_v40 = vld [vmem:[#allocation2 + $0x28] sm:$0xff]  ;;  %v1020_v1 = vld [vmem:[%s1790_s2] ss:$0 sm:$0xff] }
  0x7c   : > { %v297_v38 = vld [vmem:[#allocation2] sm:$0xff]  ;;  %v305_v41 = vpack.c.bf16 %v302_v40, %v292_v35  ;;  %v1301_v61 = vld [vmem:[#allocation8 + $0xb8] sm:$0xff]  }
  0x7d   : > { %1086 = vmatpush3.bf16.msra.mxu0 %v1267_v14  ;;  %1148 = vmatpush3.bf16.msra.mxu1 %v1268_v15  ;;  %v303_v39 = vpack.c.bf16 %v284_v33, %v297_v38  ;;  %v1045_v29 = vld [vmem:[%s1792_s4] ss:$0 sm:$0xff] }
  0x7e   : > { %1087 = vmatprep.subr.bf16.mxu0 %v1269_v16  ;;  %1149 = vmatprep.subr.bf16.mxu1 %v1467_v0 }
  0x81   : > { %1088 = vmatpush3.bf16.msra.mxu0 %v1270_v17  ;;  %1150 = vmatpush3.bf16.msra.mxu1 %v1271_v18 }
  0x82   : > { %1089 = vmatprep.subr.bf16.mxu0 %v1272_v19  ;;  %1151 = vmatprep.subr.bf16.mxu1 %v1467_v0 }
  0x85   : > { %1090 = vmatpush3.bf16.msra.mxu0 %v1273_v20  ;;  %1152 = vmatpush3.bf16.msra.mxu1 %v1274_v23 }
  0x86   : > { %1091 = vmatprep.subr.bf16.mxu0 %v1275_v24  ;;  %1153 = vmatprep.subr.bf16.mxu1 %v1467_v0 }
  0x89   : > { %1092 = vmatpush3.bf16.msra.mxu0 %v1276_v28  ;;  %1154 = vmatpush3.bf16.msra.mxu1 %v1277_v30 }
  0x8a   : > { %1108 = vmatprep.subr.bf16.mxu0 %v1278_v32  ;;  %1159 = vmatprep.subr.bf16.mxu1 %v1467_v0 }
  0x8c   : > { %538 = vmatmul.mubr.bf16.vlgmr.msra.gmra.mrb[0].mxu0 %v303_v39  ;;  %1156 = vmatmul.mubr.bf16.vlgmr.msra.gmra.mrb[0].mxu1 %v305_v41 }
  0x8d   : > { %1109 = vmatpush3.bf16.msra.mxu0 %v1279_v34  ;;  %1160 = vmatpush3.bf16.msra.mxu1 %v1280_v36 }
  0x8e   : > { %1110 = vmatprep.subr.bf16.mxu0 %v1281_v37  ;;  %1161 = vmatprep.subr.bf16.mxu1 %v1467_v0 }
  0x8f   : > { %1175 = vmatprep.mubr.msk.bf16.mxu1 %vm1468_vm0, %v1467_v0 }
  0x91   : > { %1111 = vmatpush3.bf16.msra.mxu0 %v1282_v42  ;;  %1162 = vmatpush3.bf16.msra.mxu1 %v1283_v43 }
  0x92   : > { %1163 = vmatprep.subr.bf16.mxu1 %v1467_v0  ;;  %1112 = vmatprep.subr.bf16.mxu0 %v1284_v44 }
  0x95   : > { %1113 = vmatpush3.bf16.msra.mxu0 %v1285_v45  ;;  %1164 = vmatpush3.bf16.msra.mxu1 %v1286_v46 }
  0x96   : > { %1114 = vmatprep.subr.bf16.mxu0 %v1287_v47  ;;  %1165 = vmatprep.subr.bf16.mxu1 %v1467_v0 }
  0x99   : > { %1115 = vmatpush3.bf16.msra.mxu0 %v1288_v48  ;;  %1166 = vmatpush3.bf16.msra.mxu1 %v1289_v49 }
  0x9a   : > { %1116 = vmatprep.subr.bf16.mxu0 %v1290_v50  ;;  %1167 = vmatprep.subr.bf16.mxu1 %v1467_v0 }
  0x9d   : > { %1117 = vmatpush3.bf16.msra.mxu0 %v1291_v51  ;;  %1168 = vmatpush3.bf16.msra.mxu1 %v1292_v52 }
  0x9e   : > { %1118 = vmatprep.subr.bf16.mxu0 %v1293_v53  ;;  %1169 = vmatprep.subr.bf16.mxu1 %v1467_v0 }
  0xa1   : > { %1119 = vmatpush3.bf16.msra.mxu0 %v1294_v54  ;;  %1170 = vmatpush3.bf16.msra.mxu1 %v1295_v55 }
  0xa2   : > { %1120 = vmatprep.subr.bf16.mxu0 %v1296_v56  ;;  %1171 = vmatprep.subr.bf16.mxu1 %v1467_v0 }
  0xa5   : > { %1121 = vmatpush3.bf16.msra.mxu0 %v1297_v57  ;;  %1172 = vmatpush3.bf16.msra.mxu1 %v1298_v58 }
  0xa6   : > { %1122 = vmatprep.subr.bf16.mxu0 %v1299_v59  ;;  %1173 = vmatprep.subr.bf16.mxu1 %v1467_v0 }
  0xa9   : > { %1123 = vmatpush3.bf16.msra.mxu0 %v1300_v60  ;;  %1174 = vmatpush3.bf16.msra.mxu1 %v1301_v61 }
 0x15f   : > { %v1093_v62 = vpop.f32.mrb[0].mxu0  ;;  %v580_v2 = vpop.f32.mrb[0].mxu1 }
 0x160   : > { %v1094_v63 = vpop.f32.mrb[1].mxu0  ;;  %v1157_v5 = vpop.f32.mrb[1].mxu1 }
 0x161   : > { %v1095_v3 = vadd.f32 %v1094_v63, %v1093_v62  ;;  %v1096_v4 = vpop.f32.mrb[2].mxu0  ;;  %v583_v7 = vpop.f32.mrb[2].mxu1 }
 0x162   : > { %v1097_v6 = vpop.f32.mrb[3].mxu0  ;;  %v1158_v10 = vpop.f32.mrb[3].mxu1 }
 0x163   : > { %v540_v8 = vadd.f32 %v1095_v3, %v1020_v1  ;;  %v1098_v9 = vadd.f32 %v1097_v6, %v1096_v4 }
 0x165   : > { %v581_v11 = vadd.f32 %v580_v2, %v540_v8  ;;  %v543_v12 = vadd.f32 %v1098_v9, %v1020_v1 }
 0x167   : > { %v587_v0 = vmax.f32 %v581_v11, 0.0  ;;  %v584_v13 = vadd.f32 %v583_v7, %v543_v12 }
 0x169   : > { %v593_v14 = vrot.slane %v587_v0, 7  ;;  %v588_v15 = vmax.f32 %v584_v13, 0.0  ;;  %v600_v16 = vrot.slane %v587_v0, 1 }
 0x16b   : > { %598 = vst [vmem:[#allocation2] sm:$0xfe] %v593_v14  ;;  %v594_v17 = vrot.slane %v588_v15, 7  ;;  %v601_v18 = vrot.slane %v588_v15, 1  ;;  %v614_v19 = vpack.c.bf16 %v588_v15, %v587_v0 }
 0x16d   : > { %v595_v20 = vsel %vm281_vm1, %v593_v14, %v594_v17  ;;  %v602_v23 = vsel %vm289_vm2, %v600_v16, %v601_v18  ;;  %606 = vst [vmem:[#allocation2 + $0x28] sm:$0x7f] %v601_v18  ;;  %847 = vmatprep.mubr.bf16.mxu0 %v614_v19 }
 0x172   : > { %v607_v24 = vld [vmem:[#allocation2] sm:$0xff] }
 0x173   : > { %v613_v25 = vpack.c.bf16 %v595_v20, %v607_v24 }
 0x174   : > { %v612_v26 = vld [vmem:[#allocation2 + $0x28] sm:$0xff] }
 0x175   : > { %848 = vmatmul.mubr.bf16.vlgmr.msra.gmra.mrb[4].mxu0 %v613_v25  ;;  %v615_v27 = vpack.c.bf16 %v612_v26, %v602_v23 }
 0x177   : > { %1176 = vmatmul.mubr.bf16.vlgmr.msra.gmra.mrb[4].mxu1 %v615_v27 }
 0x248   : > { %v1124_v28 = vpop.f32.mrb[4].mxu0 }
 0x249   : > { %v1125_v30 = vpop.f32.mrb[5].mxu0 }
 0x24a   : > { %v890_v31 = vpop.f32.mrb[4].mxu1  ;;  %v1126_v32 = vadd.f32 %v1125_v30, %v1124_v28  ;;  %v1127_v33 = vpop.f32.mrb[6].mxu0 }
 0x24b   : > { %v1177_v34 = vpop.f32.mrb[5].mxu1  ;;  %v1128_v35 = vpop.f32.mrb[7].mxu0 }
 0x24c   : > { %v850_v36 = vadd.f32 %v1126_v32, %v1045_v29  ;;  %v893_v37 = vpop.f32.mrb[6].mxu1  ;;  %v1129_v38 = vadd.f32 %v1128_v35, %v1127_v33 }
 0x24d   : > { %v1178_v39 = vpop.f32.mrb[7].mxu1 }
 0x24e   : > { %v891_v40 = vadd.f32 %v890_v31, %v850_v36  ;;  %v853_v41 = vadd.f32 %v1129_v38, %v1045_v29 }
 0x250   : > { %v897_v42 = vadd.f32 %v891_v40, %v1701_v21  ;;  %v894_v43 = vadd.f32 %v893_v37, %v853_v41 }
 0x252   : > { %899 = vst [vmem:[%s271_s11] sm:$0xff] %v897_v42  ;;  %v898_v44 = vadd.f32 %v894_v43, %v1704_v22 }
 0x254   : > { %900 = vst [vmem:[%s271_s11 + $0x8] sm:$0xff] %v898_v44 }
 0x255   : > { %1401 = shalt.err (!%p1398_p2)
}
 0x256   : > { %s1402_s6 = scalar_lea.hbm %s1741_s9, 256  ;;  %s1406_s8 = scalar_lea.hbm %s1793_s5, 512 }
 0x257   : > { %p1403_p13 = scmp.ne.s32.totalorder %s1741_s9, %s1402_s6  ;;  %p1407_p4 = scmp.lt.u32.totalorder %s1741_s9, %s1793_s5 }
 0x258   : > { %p1408_p5 = scmp.lt.u32.totalorder %s1406_s8, %s1402_s6  ;;  %p1410_p11 = scmp.lt.u32.totalorder %s1402_s6, %s1741_s9 }
 0x259   : > { %p1404_p6 = pnand %p1403_p13, %p1807_p0 }
 0x25a   : > { %p1409_p8 = por %p1408_p5, %p1407_p4 }
 0x25b   : > { %p1405_p10 = pneg %p1404_p6 }
 0x25c   : > { %p1411_p1 = por %p1410_p11, %p1409_p8 }
 0x25e   : > { %p1412_p3 = pnand %p1411_p1, %p1405_p10 }
 0x260   : > { %1415 = shalt.err (!%p1412_p3)
}
 0x261   : > { %s1470_s30 = smov 128   ;;  %s1471_s15 = smov 8  }
 0x262   : > { %1189 = dma.vmem_to_hbm [thread:$0]  (%p1807_p0), %s1743_s28, 256, %s1741_s9, %s902_s12, %s1470_s30, %s1470_s30, %s1471_s15  }
 0x263 PF: > { %s930_s16 = sand.u32 1, %s1446_s18   ;;  %p1808_p7 = scmp.ne.s32.totalorder %s1798_s25, 0 }
 0x264   : > { %p1809_p9 = scmp.ge.s32.totalorder %s1458_s21, 2  ;;  %s931_s13 = scalar_lea.sflag [#allocation5], %s930_s16 }
 0x266   : > { %p1203_p12 = pnand %p1809_p9, %p1808_p7 }
 0x268   : > { %1441 = dma.done.wait (!%p1203_p12), %s931_s13, 256  }
 0x269   : > { %1443 = vsyncadd (!%p1203_p12), %s931_s13, 4294967040  ;;  %p19_p2 = scmp.ge.s32.totalorder %s1612_s14, 4   ;;  %s1810_s18 = smov %s1450_s19 }
 0x26a   : > { %s1811_s19 = smov %s1454_s20  ;;  %s1812_s20 = smov %s1628_s27 }
 0x26b   : > { %s1813_s21 = smov %s1612_s14  ;;  %21 = sbr.rel (!%p19_p2) target bundleno = 6 (0x6), region = 93 }
 0x272   :  { %936 = vsyncpa [#allocation4], 1 }
 0x273   :  { %938 = vsyncpa [#allocation4 + $0x1], 1 }
 0x274   :  { %939 = vsyncpa [#allocation7], 1 }
 0x275   :  { %940 = vsyncpa [#allocation5], 1 }
 0x276   :  { %942 = vsyncpa [#allocation5 + $0x1], 1 }

</bundles_post_ra>
